<compile_context>
chip_gen: v7x
topology: tpu7x:2x2x1
jax: 0.10.0
libtpu: 0.0.40
codegen_flags: <defaults>
</compile_context>

<pallas_src>
import functools
import numpy as np
import jax
import jax.numpy as jnp
from jax import lax
from jax.experimental import pallas as pl
from jax.experimental.pallas import tpu as pltpu


# -----------------------------------------------------------------------------
# Fused multi-timestep kernel.  Per grid step (b_block, t):
#   P <- alpha*P + tau_mem*Q          (uses OLD Q: simultaneous assignment)
#   Q <- beta *Q + tau_syn*x_t
#   U  = conv(P) + bias - gamma*R
#   S  = (U >= thr) - (U <= -thr)
#   R  <- gamma*R + S*thr
#   U_aux = sigmoid(U)
# conv is computed as K row-banded matmuls on the flat (Bt*Hs, W*Cin) slab:
#   conv_row[m = b*Hs + oh, :] = sum_kh  P_flat[m + kh, :] @ w_band[kh]
# Rows between samples (oh >= OH) are garbage and are discarded by the glue.
# -----------------------------------------------------------------------------
def _lif_conv_seq_kernel(x_ref, p0_ref, q0_ref, r0_ref, w_ref, b_ref,
                         s_ref, ua_ref, p_ref, q_ref, r_ref, *,
                         alpha, beta, gamma, thr,
                         inp_mult_p, inp_mult_q, K, MO, mxu_dtype):
    t = pl.program_id(1)

    # t == 0: pull the carried-in state into the VMEM-resident output blocks
    # (their index_maps ignore t, so they live in VMEM for the whole T loop
    #  and are written back to HBM once per batch block).
    @pl.when(t == 0)
    def _():
        p_ref[...] = p0_ref[...]
        q_ref[...] = q0_ref[...]
        r_ref[...] = r0_ref[...]

    # ---- LIF trace update (f32 on the VPU); P uses the OLD Q ---------------
    p = p_ref[...]
    q = q_ref[...]
    p_new = alpha * p + inp_mult_p * q
    q_new = beta * q + inp_mult_q * x_ref[0]
    p_ref[...] = p_new
    q_ref[...] = q_new

    # ---- conv: K row-banded matmuls, M = Bt*Hs-(K-1), f32 accumulation -----
    acc = jnp.dot(p_new[0:MO, :].astype(mxu_dtype), w_ref[0],
                  preferred_element_type=jnp.float32)
    for kh in range(1, K):
        acc = acc + jnp.dot(p_new[kh:kh + MO, :].astype(mxu_dtype), w_ref[kh],
                            preferred_element_type=jnp.float32)
    conv = acc + b_ref[...]                   # broadcast (1, OWCp) bias row

    # ---- refractory decay, threshold, spike, sigmoid ------------------------
    r_dec = gamma * r_ref[0:MO, :]
    u = conv - r_dec
    s = jnp.where(u >= thr, 1.0, 0.0) - jnp.where(u <= -thr, 1.0, 0.0)
    r_ref[0:MO, :] = r_dec + s * thr
    s_ref[0, 0:MO, :] = s.astype(s_ref.dtype)
    ua_ref[0, 0:MO, :] = jax.nn.sigmoid(u).astype(ua_ref.dtype)


def _maxpool_nhwc_seq(x, pooling):
    """torch.nn.MaxPool2d(kernel=pooling, stride=pooling, padding=(pooling-1)//2)
    applied to (T, B, H, W, C)."""
    if pooling == 1:
        return x
    p = (pooling - 1) // 2
    return lax.reduce_window(
        x, -jnp.inf, lax.max,
        window_dimensions=(1, 1, pooling, pooling, 1),
        window_strides=(1, 1, pooling, pooling, 1),
        padding=((0, 0), (0, 0), (p, p), (p, p), (0, 0)))


class DTNLIFConv2dLayerPallas:
    def __init__(self, inp_shape, kernel_size, out_channels,
                 tau_syn, tau_mem, tau_ref, delta_t,
                 pooling=1, padding=0, bias=True, thr=1.0,
                 dropout_p=0.5, output_neurons=10, weight_mult=1.0,
                 batch_block=None, mxu_dtype=jnp.bfloat16,
                 out_dtype=jnp.bfloat16, key=jax.random.PRNGKey(0)):
        Cin, H, W = inp_shape
        Cout = out_channels
        K = kernel_size
        self.inp_shape = tuple(inp_shape)
        self.Cin, self.H, self.W = Cin, H, W
        self.K = K
        self.Cout = Cout
        self.padding = padding
        self.pooling = pooling
        self.thr = float(thr)
        self.dropout_p = float(dropout_p)
        self.output_neurons = output_neurons
        self.mxu_dtype = mxu_dtype
        self.out_dtype = out_dtype
        self.batch_block = batch_block

        # --- neuron time constants (scalar-tau path of the reference) --------
        self.beta = float(1.0 - delta_t / tau_syn)
        self.alpha = float(1.0 - delta_t / tau_mem)
        self.gamma = float(1.0 - delta_t / tau_ref)
        self.inp_mult_q = float(1.0 / (1.0 - self.beta))    # tau_syn (steps)
        self.inp_mult_p = float(1.0 / (1.0 - self.alpha))   # tau_mem (steps)

        # --- deterministic parameter init (mirrors the torch uniform init) ---
        fan_in = K * K * Cin
        stdv = 1.0 / np.sqrt(fan_in)
        k_w, k_b, k_s = jax.random.split(key, 3)
        w = jax.random.uniform(k_w, (Cout, Cin, K, K), jnp.float32,
                               -stdv * weight_mult, stdv * weight_mult)
        if bias:
            b = jax.random.uniform(k_b, (Cout,), jnp.float32,
                                   -stdv * weight_mult * 100.0,
                                   stdv * weight_mult * 100.0)
        else:
            b = jnp.zeros((Cout,), jnp.float32)
        self.w_conv = w
        self.bias_vec = b

        # --- shapes -----------------------------------------------------------
        self.OH = H + 2 * padding - K + 1
        self.OW = W + 2 * padding - K + 1
        self.Hs = H + 2 * padding            # rows per sample in the flat layout
        self.WC = W * Cin                    # input lanes
        self.OWC = self.OW * Cout            # valid output lanes
        self.OWCp = ((self.OWC + 127) // 128) * 128   # lane-dense (128) padding
        pad_p = (pooling - 1) // 2
        self.OHp = (self.OH + 2 * pad_p - pooling) // pooling + 1
        self.OWp = (self.OW + 2 * pad_p - pooling) // pooling + 1
        self.F2 = Cout * self.OHp * self.OWp          # prod(out_shape2)

        # --- banded (Toeplitz) conv weight, built once on the host -----------
        #   w_band[kh, iw*Cin + ci, ow*Cout + co] = w[co, ci, kh, kw]
        #   with iw = ow + kw - padding  (out-of-range iw stays 0 => W padding)
        # TODO(synk): band density ~ K*Cin/(W*Cin); at large W/Cout replace with
        # blocked im2col / roll-shift accumulate (v5e MXU headroom), and tile
        # the OWCp axis with its own grid dim + vmem_limit_bytes for v7x 64 MiB.
        w_np = np.asarray(w)
        w_band = np.zeros((K, self.WC, self.OWCp), np.float32)
        for kh in range(K):
            for kw in range(K):
                blk = w_np[:, :, kh, kw].T            # (Cin, Cout)
                for ow in range(self.OW):
                    iw = ow + kw - padding
                    if 0 <= iw < W:
                        w_band[kh, iw * Cin:(iw + 1) * Cin,
                               ow * Cout:(ow + 1) * Cout] = blk
        self.w_band = jnp.asarray(w_band).astype(mxu_dtype)
        bias_row = np.zeros((1, self.OWCp), np.float32)
        bias_row[0, :self.OWC] = np.tile(np.asarray(b), self.OW)
        self.bias_row = jnp.asarray(bias_row)

        # --- sign random readout (QLinearLayerSign, bias=False, no quant) ----
        lc_ampl = 0.5
        stdv_r = lc_ampl / np.sqrt(self.F2)
        w_sign = jax.random.uniform(k_s, (output_neurons, self.F2), jnp.float32,
                                    -stdv_r, stdv_r)
        self.w_sign = w_sign
        # Pre-permute rows once so the readout consumes the NHWC-flattened
        # pooled activation directly (no per-timestep transpose).
        g = np.arange(self.F2)
        oh = g // (self.OWp * Cout)
        rem = g % (self.OWp * Cout)
        ow = rem // Cout
        c = rem % Cout
        f_nchw = c * (self.OHp * self.OWp) + oh * self.OWp + ow
        self.w_sign_perm = jnp.asarray(np.asarray(w_sign).T[f_nchw, :])
        # TODO(synk): weight_fa (feedback-alignment) only affects backward; not built.

    # -------------------------------------------------------------------------
    def _pick_bt(self, B):
        if self.batch_block is not None:
            bt = int(self.batch_block)
            if B % bt == 0 and (bt * self.Hs) % 8 == 0:
                return bt
            return B
        for d in range(B, 0, -1):
            if B % d == 0 and (d * self.Hs) % 8 == 0 and d * self.Hs <= 256:
                return d
        return B

    def state_init(self, batch_size):
        return (jnp.zeros((batch_size * self.Hs, self.WC), jnp.float32),   # P
                jnp.zeros((batch_size * self.Hs, self.WC), jnp.float32),   # Q
                jnp.zeros((batch_size * self.Hs, self.OWCp), jnp.float32)) # R

    def input_state_to_nchw(self, state_flat, batch_size):
        x = state_flat.reshape(batch_size, self.Hs, self.W, self.Cin)
        x = x[:, self.padding:self.padding + self.H]
        return jnp.transpose(x, (0, 3, 1, 2))

    def conv_state_to_nchw(self, state_flat, batch_size):
        x = state_flat.reshape(batch_size, self.Hs, self.OWCp)
        x = x[:, :self.OH, :self.OWC].reshape(batch_size, self.OH, self.OW,
                                              self.Cout)
        return jnp.transpose(x, (0, 3, 1, 2))

    # -------------------------------------------------------------------------
    def forward_sequence(self, x_seq_nchw, P=None, Q=None, R=None,
                         y_local=None, train_flag=False, test_flag=True):
        """Runs all T timesteps in one fused pallas_call.  x_seq: (T,B,Cin,H,W).
        Note: the passed-in P/Q/R buffers are donated (updated in place)."""
        T, B, Cin, H, W = x_seq_nchw.shape
        assert (Cin, H, W) == self.inp_shape
        K, Hs, WC, OWCp = self.K, self.Hs, self.WC, self.OWCp
        if P is None:
            P, Q, R = self.state_init(B)

        # One-time relayout of the whole spike train: NCHW -> (T, B*Hs, W*Cin).
        x_nhwc = jnp.transpose(x_seq_nchw.astype(jnp.float32), (0, 1, 3, 4, 2))
        if self.padding > 0:
            x_pad = jnp.zeros((T, B, Hs, W, Cin), jnp.float32)
            x_pad = x_pad.at[:, :, self.padding:self.padding + H].set(x_nhwc)
        else:
            x_pad = x_nhwc
        x_rows = x_pad.reshape(T, B * Hs, WC)

        Bt = self._pick_bt(B)
        nb = B // Bt
        BHs = Bt * Hs
        MO = BHs - (K - 1)        # conv rows computed per grid step

        x_spec = pl.BlockSpec((1, BHs, WC), lambda b, t: (t, b, 0))
        pq_spec = pl.BlockSpec((BHs, WC), lambda b, t: (b, 0))
        r_spec = pl.BlockSpec((BHs, OWCp), lambda b, t: (b, 0))
        su_spec = pl.BlockSpec((1, BHs, OWCp), lambda b, t: (t, b, 0))

        kernel = functools.partial(
            _lif_conv_seq_kernel,
            alpha=self.alpha, beta=self.beta, gamma=self.gamma, thr=self.thr,
            inp_mult_p=self.inp_mult_p, inp_mult_q=self.inp_mult_q,
            K=K, MO=MO, mxu_dtype=self.mxu_dtype)

        s_seq, ua_seq, P_fin, Q_fin, R_fin = pl.pallas_call(
            kernel,
            out_shape=(
                jax.ShapeDtypeStruct((T, B * Hs, OWCp), self.out_dtype),  # S
                jax.ShapeDtypeStruct((T, B * Hs, OWCp), self.out_dtype),  # U_aux
                jax.ShapeDtypeStruct((B * Hs, WC), jnp.float32),          # P
                jax.ShapeDtypeStruct((B * Hs, WC), jnp.float32),          # Q
                jax.ShapeDtypeStruct((B * Hs, OWCp), jnp.float32),        # R
            ),
            grid=(nb, T),
            in_specs=[
                x_spec,                                               # x_t rows
                pq_spec, pq_spec, r_spec,                             # P0,Q0,R0
                pl.BlockSpec((K, WC, OWCp), lambda b, t: (0, 0, 0)),  # w_band
                pl.BlockSpec((1, OWCp), lambda b, t: (0, 0)),         # bias row
            ],
            out_specs=[su_spec, su_spec, pq_spec, pq_spec, r_spec],
            input_output_aliases={1: 2, 2: 3, 3: 4},  # P,Q,R updated in place
            compiler_params=pltpu.CompilerParams(
                dimension_semantics=("parallel", "arbitrary")),
        )(x_rows, P, Q, R, self.w_band, self.bias_row)

        # ---- XLA glue: strip pads, pool, sign-random readout -----------------
        OH, OW, Cout = self.OH, self.OW, self.Cout
        s_nhwc = (s_seq.reshape(T, B, Hs, OWCp)[:, :, :OH, :self.OWC]
                  .astype(jnp.float32).reshape(T, B, OH, OW, Cout))
        s_pooled = _maxpool_nhwc_seq(s_nhwc, self.pooling)
        s_pooled_nchw = jnp.transpose(s_pooled, (0, 1, 4, 2, 3))

        if test_flag or train_flag:
            ua_nhwc = (ua_seq.reshape(T, B, Hs, OWCp)[:, :, :OH, :self.OWC]
                       .astype(jnp.float32).reshape(T, B, OH, OW, Cout))
            ua_pooled = _maxpool_nhwc_seq(ua_nhwc, self.pooling)
            flat = ua_pooled.reshape(T, B, self.F2)     # NHWC flatten order
            # NOTE: the reference multiplies by dropout_p even in eval mode.
            rreadout = ((jnp.einsum('tbf,fo->tbo', flat, self.w_sign_perm)
                         + 1.0) * 0.5) * self.dropout_p
        else:
            rreadout = jnp.zeros((T, B, 1), jnp.float32)
        pred = jnp.argmax(rreadout, axis=-1)

        # TODO(synk): training-mode loss terms (part1/part2/part3) need the user
        # loss_fn / labels and training-dropout RNG; not reproduced here.
        loss_gen = None
        parts = None
        return ((s_pooled_nchw, loss_gen, pred, parts, rreadout),
                (P_fin, Q_fin, R_fin))


# -----------------------------------------------------------------------------
# Pure-JAX reference (lax.conv, NCHW) of the torch forward, for validation.
# -----------------------------------------------------------------------------
def reference_forward_sequence(layer, x_seq_nchw):
    T, B, Cin, H, W = x_seq_nchw.shape
    w, b = layer.w_conv, layer.bias_vec
    pad = layer.padding
    P = jnp.zeros((B, Cin, H, W), jnp.float32)
    Q = jnp.zeros_like(P)
    R = jnp.zeros((B, layer.Cout, layer.OH, layer.OW), jnp.float32)
    s_all, ua_all = [], []
    for t in range(T):
        x = x_seq_nchw[t].astype(jnp.float32)
        P, R, Q = (layer.alpha * P + layer.inp_mult_p * Q,
                   layer.gamma * R,
                   layer.beta * Q + layer.inp_mult_q * x)
        conv = lax.conv_general_dilated(
            P, w, window_strides=(1, 1),
            padding=[(pad, pad), (pad, pad)],
            dimension_numbers=('NCHW', 'OIHW', 'NCHW'))
        U = conv + b[None, :, None, None] - R
        S = ((U >= layer.thr).astype(jnp.float32)
             - (U <= -layer.thr).astype(jnp.float32))
        R = R + S * layer.thr
        s_all.append(S)
        ua_all.append(jax.nn.sigmoid(U))
    S_seq = jnp.stack(s_all)
    Ua_seq = jnp.stack(ua_all)

    def pool_nchw(x):
        if layer.pooling == 1:
            return x
        p = (layer.pooling - 1) // 2
        return lax.reduce_window(
            x, -jnp.inf, lax.max,
            (1, 1, 1, layer.pooling, layer.pooling),
            (1, 1, 1, layer.pooling, layer.pooling),
            ((0, 0), (0, 0), (0, 0), (p, p), (p, p)))

    S_pool = pool_nchw(S_seq)
    Ua_pool = pool_nchw(Ua_seq)
    flat = Ua_pool.reshape(T, B, layer.F2)               # NCHW flatten order
    rread = ((jnp.einsum('tbf,of->tbo', flat, layer.w_sign) + 1.0) * 0.5
             ) * layer.dropout_p
    return S_pool, rread, P, Q, R


if __name__ == "__main__":
    key = jax.random.PRNGKey(0)
    T, B, Cin, H, W = 6, 8, 4, 16, 16
    Cout, K = 8, 3

    k_in, k_layer = jax.random.split(key)
    x_seq = (jax.random.uniform(k_in, (T, B, Cin, H, W)) < 0.3
             ).astype(jnp.float32)

    common = dict(inp_shape=(Cin, H, W), kernel_size=K, out_channels=Cout,
                  tau_syn=5e-3, tau_mem=10e-3, tau_ref=2e-3, delta_t=1e-3,
                  pooling=1, padding=0, bias=True, thr=1.0,
                  dropout_p=0.5, output_neurons=10, weight_mult=1.0,
                  batch_block=4, key=k_layer)

    # ---- f32-operand instance: validate against the pure-JAX reference ------
    layer_val = DTNLIFConv2dLayerPallas(mxu_dtype=jnp.float32,
                                        out_dtype=jnp.float32, **common)
    (s_pool, _, pred, _, rread), (Pf, Qf, Rf) = layer_val.forward_sequence(
        x_seq, test_flag=True)
    s_ref, rread_ref, P_ref, Q_ref, R_ref = reference_forward_sequence(
        layer_val, x_seq)
    assert s_pool.shape == (T, B, Cout, layer_val.OHp, layer_val.OWp)
    assert pred.shape == (T, B)
    assert float(jnp.mean(jnp.abs(s_pool - s_ref))) < 1e-3
    assert float(jnp.max(jnp.abs(rread - rread_ref))) < 1e-2
    assert float(jnp.max(jnp.abs(
        layer_val.input_state_to_nchw(Pf, B) - P_ref))) < 1e-2
    assert float(jnp.max(jnp.abs(
        layer_val.input_state_to_nchw(Qf, B) - Q_ref))) < 1e-2
    assert float(jnp.mean(jnp.abs(
        layer_val.conv_state_to_nchw(Rf, B) - R_ref))) < 1e-3

    # ---- bf16-MXU / bf16-writeback performance instance ----------------------
    layer = DTNLIFConv2dLayerPallas(mxu_dtype=jnp.bfloat16,
                                    out_dtype=jnp.bfloat16, **common)
    (s_pool_b, _, pred_b, _, _), state_b = layer.forward_sequence(
        x_seq, test_flag=True)
    jax.block_until_ready((s_pool_b, pred_b, state_b))
    assert s_pool_b.shape == (T, B, Cout, 14, 14)
    assert bool(jnp.all(jnp.isfinite(s_pool_b)))
    print("KERNEL_OK")
</pallas_src>

<mosaic_0001>
module attributes {stable_mosaic.version = 11 : i64} {
  func.func @_lif_conv_seq_kernel(%arg0: i32, %arg1: i32, %arg2: memref<1x64x64xf32, #tpu.memory_space<vmem>>, %arg3: memref<64x64xf32, #tpu.memory_space<vmem>>, %arg4: memref<64x64xf32, #tpu.memory_space<vmem>>, %arg5: memref<64x128xf32, #tpu.memory_space<vmem>>, %arg6: memref<3x64x128xf32, #tpu.memory_space<vmem>>, %arg7: memref<1x128xf32, #tpu.memory_space<vmem>>, %arg8: memref<1x64x128xf32, #tpu.memory_space<vmem>>, %arg9: memref<1x64x128xf32, #tpu.memory_space<vmem>>, %arg10: memref<64x64xf32, #tpu.memory_space<vmem>>, %arg11: memref<64x64xf32, #tpu.memory_space<vmem>>, %arg12: memref<64x128xf32, #tpu.memory_space<vmem>>) attributes {dimension_semantics = [#tpu.dimension_semantics<parallel>, #tpu.dimension_semantics<arbitrary>], iteration_bounds = array<i64: 2, 6>, scalar_prefetch = 0 : i64, scratch_operands = 0 : i64, tpu.core_type = #tpu.core_type<tc>, window_params = [{transform_indices = @transform_0, window_bounds = array<i64: 1, 64, 64>}, {transform_indices = @transform_1, window_bounds = array<i64: 64, 64>}, {transform_indices = @transform_2, window_bounds = array<i64: 64, 64>}, {transform_indices = @transform_3, window_bounds = array<i64: 64, 128>}, {pipeline_mode = #tpu.pipeline_mode<synchronous>, transform_indices = @transform_4, window_bounds = array<i64: 3, 64, 128>}, {pipeline_mode = #tpu.pipeline_mode<synchronous>, transform_indices = @transform_5, window_bounds = array<i64: 1, 128>}, {transform_indices = @transform_6, window_bounds = array<i64: 1, 64, 128>}, {transform_indices = @transform_7, window_bounds = array<i64: 1, 64, 128>}, {transform_indices = @transform_8, window_bounds = array<i64: 64, 64>}, {transform_indices = @transform_9, window_bounds = array<i64: 64, 64>}, {transform_indices = @transform_10, window_bounds = array<i64: 64, 128>}]} {
    %c0_i32 = arith.constant 0 : i32
    %0 = arith.cmpi eq, %arg1, %c0_i32 : i32
    %1 = arith.extui %0 : i1 to i32
    %c0_i32_0 = arith.constant 0 : i32
    %2 = arith.cmpi ne, %1, %c0_i32_0 : i32
    scf.if %2 {
      %c0_45 = arith.constant 0 : index
      %c0_46 = arith.constant 0 : index
      %66 = vector.load %arg3[%c0_45, %c0_46] : memref<64x64xf32, #tpu.memory_space<vmem>>, vector<64x64xf32>
      %c0_47 = arith.constant 0 : index
      %c0_48 = arith.constant 0 : index
      %67 = vector.load %arg10[%c0_47, %c0_48] : memref<64x64xf32, #tpu.memory_space<vmem>>, vector<64x64xf32>
      tpu.vector_store %arg10[%c0_47, %c0_48], %66 {strides = array<i32>} : memref<64x64xf32, #tpu.memory_space<vmem>>, vector<64x64xf32>,
      %c0_49 = arith.constant 0 : index
      %c0_50 = arith.constant 0 : index
      %68 = vector.load %arg4[%c0_49, %c0_50] : memref<64x64xf32, #tpu.memory_space<vmem>>, vector<64x64xf32>
      %c0_51 = arith.constant 0 : index
      %c0_52 = arith.constant 0 : index
      %69 = vector.load %arg11[%c0_51, %c0_52] : memref<64x64xf32, #tpu.memory_space<vmem>>, vector<64x64xf32>
      tpu.vector_store %arg11[%c0_51, %c0_52], %68 {strides = array<i32>} : memref<64x64xf32, #tpu.memory_space<vmem>>, vector<64x64xf32>,
      %c0_53 = arith.constant 0 : index
      %c0_54 = arith.constant 0 : index
      %70 = vector.load %arg5[%c0_53, %c0_54] : memref<64x128xf32, #tpu.memory_space<vmem>>, vector<64x128xf32>
      %c0_55 = arith.constant 0 : index
      %c0_56 = arith.constant 0 : index
      %71 = vector.load %arg12[%c0_55, %c0_56] : memref<64x128xf32, #tpu.memory_space<vmem>>, vector<64x128xf32>
      tpu.vector_store %arg12[%c0_55, %c0_56], %70 {strides = array<i32>} : memref<64x128xf32, #tpu.memory_space<vmem>>, vector<64x128xf32>,
    } else {
    }
    %c0 = arith.constant 0 : index
    %c0_1 = arith.constant 0 : index
    %3 = vector.load %arg10[%c0, %c0_1] : memref<64x64xf32, #tpu.memory_space<vmem>>, vector<64x64xf32>
    %c0_2 = arith.constant 0 : index
    %c0_3 = arith.constant 0 : index
    %4 = vector.load %arg11[%c0_2, %c0_3] : memref<64x64xf32, #tpu.memory_space<vmem>>, vector<64x64xf32>
    %cst = arith.constant 0.899999976 : f32
    %5 = vector.broadcast %cst : f32 to vector<64x64xf32>
    %6 = arith.mulf %5, %3 : vector<64x64xf32>
    %cst_4 = arith.constant 1.000000e+01 : f32
    %7 = vector.broadcast %cst_4 : f32 to vector<64x64xf32>
    %8 = arith.mulf %7, %4 : vector<64x64xf32>
    %9 = arith.addf %6, %8 : vector<64x64xf32>
    %cst_5 = arith.constant 8.000000e-01 : f32
    %10 = vector.broadcast %cst_5 : f32 to vector<64x64xf32>
    %11 = arith.mulf %10, %4 : vector<64x64xf32>
    %c0_6 = arith.constant 0 : index
    %c0_7 = arith.constant 0 : index
    %c0_8 = arith.constant 0 : index
    %12 = vector.load %arg2[%c0_6, %c0_7, %c0_8] : memref<1x64x64xf32, #tpu.memory_space<vmem>>, vector<1x64x64xf32>
    %13 = vector.shape_cast %12 : vector<1x64x64xf32> to vector<64x64xf32>
    %cst_9 = arith.constant 5.000000e+00 : f32
    %14 = vector.broadcast %cst_9 : f32 to vector<64x64xf32>
    %15 = arith.mulf %14, %13 : vector<64x64xf32>
    %16 = arith.addf %11, %15 : vector<64x64xf32>
    %c0_10 = arith.constant 0 : index
    %c0_11 = arith.constant 0 : index
    %17 = vector.load %arg10[%c0_10, %c0_11] : memref<64x64xf32, #tpu.memory_space<vmem>>, vector<64x64xf32>
    tpu.vector_store %arg10[%c0_10, %c0_11], %9 {strides = array<i32>} : memref<64x64xf32, #tpu.memory_space<vmem>>, vector<64x64xf32>,
    %c0_12 = arith.constant 0 : index
    %c0_13 = arith.constant 0 : index
    %18 = vector.load %arg11[%c0_12, %c0_13] : memref<64x64xf32, #tpu.memory_space<vmem>>, vector<64x64xf32>
    tpu.vector_store %arg11[%c0_12, %c0_13], %16 {strides = array<i32>} : memref<64x64xf32, #tpu.memory_space<vmem>>, vector<64x64xf32>,
    %19 = vector.extract_strided_slice %9 {offsets = [0, 0], sizes = [62, 64], strides = [1, 1]} : vector<64x64xf32> to vector<62x64xf32>
    %c0_14 = arith.constant 0 : index
    %c0_15 = arith.constant 0 : index
    %c0_16 = arith.constant 0 : index
    %20 = vector.load %arg6[%c0_14, %c0_15, %c0_16] : memref<3x64x128xf32, #tpu.memory_space<vmem>>, vector<1x64x128xf32>
    %21 = vector.shape_cast %20 : vector<1x64x128xf32> to vector<64x128xf32>
    %cst_17 = arith.constant dense<0.000000e+00> : vector<62x128xf32>
    %22 = tpu.matmul %19, %21, %cst_17 {dimension_numbers = #tpu.dot_dimension_numbers<[1], [0], [0], [1], [0, 0, 1, 1], [], []>} : vector<62x64xf32>, vector<64x128xf32>, vector<62x128xf32> -> vector<62x128xf32>
    %23 = vector.extract_strided_slice %9 {offsets = [1, 0], sizes = [62, 64], strides = [1, 1]} : vector<64x64xf32> to vector<62x64xf32>
    %c1 = arith.constant 1 : index
    %c0_18 = arith.constant 0 : index
    %c0_19 = arith.constant 0 : index
    %24 = vector.load %arg6[%c1, %c0_18, %c0_19] : memref<3x64x128xf32, #tpu.memory_space<vmem>>, vector<1x64x128xf32>
    %25 = vector.shape_cast %24 : vector<1x64x128xf32> to vector<64x128xf32>
    %cst_20 = arith.constant dense<0.000000e+00> : vector<62x128xf32>
    %26 = tpu.matmul %23, %25, %cst_20 {dimension_numbers = #tpu.dot_dimension_numbers<[1], [0], [0], [1], [0, 0, 1, 1], [], []>} : vector<62x64xf32>, vector<64x128xf32>, vector<62x128xf32> -> vector<62x128xf32>
    %27 = arith.addf %22, %26 : vector<62x128xf32>
    %28 = vector.extract_strided_slice %9 {offsets = [2, 0], sizes = [62, 64], strides = [1, 1]} : vector<64x64xf32> to vector<62x64xf32>
    %c2 = arith.constant 2 : index
    %c0_21 = arith.constant 0 : index
    %c0_22 = arith.constant 0 : index
    %29 = vector.load %arg6[%c2, %c0_21, %c0_22] : memref<3x64x128xf32, #tpu.memory_space<vmem>>, vector<1x64x128xf32>
    %30 = vector.shape_cast %29 : vector<1x64x128xf32> to vector<64x128xf32>
    %cst_23 = arith.constant dense<0.000000e+00> : vector<62x128xf32>
    %31 = tpu.matmul %28, %30, %cst_23 {dimension_numbers = #tpu.dot_dimension_numbers<[1], [0], [0], [1], [0, 0, 1, 1], [], []>} : vector<62x64xf32>, vector<64x128xf32>, vector<62x128xf32> -> vector<62x128xf32>
    %32 = arith.addf %27, %31 : vector<62x128xf32>
    %c0_24 = arith.constant 0 : index
    %c0_25 = arith.constant 0 : index
    %33 = vector.load %arg7[%c0_24, %c0_25] : memref<1x128xf32, #tpu.memory_space<vmem>>, vector<1x128xf32>
    %34 = vector.broadcast %33 : vector<1x128xf32> to vector<62x128xf32>
    %35 = arith.addf %32, %34 : vector<62x128xf32>
    %c0_26 = arith.constant 0 : index
    %c0_27 = arith.constant 0 : index
    %36 = vector.load %arg12[%c0_26, %c0_27] : memref<64x128xf32, #tpu.memory_space<vmem>>, vector<62x128xf32>
    %cst_28 = arith.constant 5.000000e-01 : f32
    %37 = vector.broadcast %cst_28 : f32 to vector<62x128xf32>
    %38 = arith.mulf %37, %36 : vector<62x128xf32>
    %39 = arith.subf %35, %38 : vector<62x128xf32>
    %cst_29 = arith.constant 1.000000e+00 : f32
    %40 = vector.broadcast %cst_29 : f32 to vector<62x128xf32>
    %41 = arith.cmpf oge, %39, %40 : vector<62x128xf32>
    %cst_30 = arith.constant 1.000000e+00 : f32
    %cst_31 = arith.constant 0.000000e+00 : f32
    %42 = vector.broadcast %cst_30 : f32 to vector<62x128xf32>
    %43 = vector.broadcast %cst_31 : f32 to vector<62x128xf32>
    %44 = arith.select %41, %42, %43 : vector<62x128xi1>, vector<62x128xf32>
    %cst_32 = arith.constant -1.000000e+00 : f32
    %45 = vector.broadcast %cst_32 : f32 to vector<62x128xf32>
    %46 = arith.cmpf ole, %39, %45 : vector<62x128xf32>
    %cst_33 = arith.constant 1.000000e+00 : f32
    %cst_34 = arith.constant 0.000000e+00 : f32
    %47 = vector.broadcast %cst_33 : f32 to vector<62x128xf32>
    %48 = vector.broadcast %cst_34 : f32 to vector<62x128xf32>
    %49 = arith.select %46, %47, %48 : vector<62x128xi1>, vector<62x128xf32>
    %50 = arith.subf %44, %49 : vector<62x128xf32>
    %cst_35 = arith.constant 1.000000e+00 : f32
    %51 = vector.broadcast %cst_35 : f32 to vector<62x128xf32>
    %52 = arith.mulf %50, %51 : vector<62x128xf32>
    %53 = arith.addf %38, %52 : vector<62x128xf32>
    %c0_36 = arith.constant 0 : index
    %c0_37 = arith.constant 0 : index
    %54 = vector.load %arg12[%c0_36, %c0_37] : memref<64x128xf32, #tpu.memory_space<vmem>>, vector<62x128xf32>
    tpu.vector_store %arg12[%c0_36, %c0_37], %53 {strides = array<i32>} : memref<64x128xf32, #tpu.memory_space<vmem>>, vector<62x128xf32>,
    %c0_38 = arith.constant 0 : index
    %c0_39 = arith.constant 0 : index
    %c0_40 = arith.constant 0 : index
    %55 = vector.load %arg8[%c0_38, %c0_39, %c0_40] : memref<1x64x128xf32, #tpu.memory_space<vmem>>, vector<1x62x128xf32>
    %56 = vector.shape_cast %55 : vector<1x62x128xf32> to vector<62x128xf32>
    %57 = vector.shape_cast %50 : vector<62x128xf32> to vector<1x62x128xf32>
    tpu.vector_store %arg8[%c0_38, %c0_39, %c0_40], %57 {strides = array<i32>} : memref<1x64x128xf32, #tpu.memory_space<vmem>>, vector<1x62x128xf32>,
    %58 = arith.negf %39 : vector<62x128xf32>
    %59 = math.exp %58 : vector<62x128xf32>
    %cst_41 = arith.constant 1.000000e+00 : f32
    %60 = vector.broadcast %cst_41 : f32 to vector<62x128xf32>
    %61 = arith.addf %60, %59 : vector<62x128xf32>
    %62 = arith.divf %60, %61 : vector<62x128xf32>
    %c0_42 = arith.constant 0 : index
    %c0_43 = arith.constant 0 : index
    %c0_44 = arith.constant 0 : index
    %63 = vector.load %arg9[%c0_42, %c0_43, %c0_44] : memref<1x64x128xf32, #tpu.memory_space<vmem>>, vector<1x62x128xf32>
    %64 = vector.shape_cast %63 : vector<1x62x128xf32> to vector<62x128xf32>
    %65 = vector.shape_cast %62 : vector<62x128xf32> to vector<1x62x128xf32>
    tpu.vector_store %arg9[%c0_42, %c0_43, %c0_44], %65 {strides = array<i32>} : memref<1x64x128xf32, #tpu.memory_space<vmem>>, vector<1x62x128xf32>,
    return
  }
  func.func @transform_0(%arg0: i32, %arg1: i32) -> (i32, i32, i32) {
    %c0_i32 = arith.constant 0 : i32
    %c0_i32_0 = arith.constant 0 : i32
    return %arg1, %arg0, %c0_i32 : i32, i32, i32
  }
  func.func @transform_1(%arg0: i32, %arg1: i32) -> (i32, i32) {
    %c0_i32 = arith.constant 0 : i32
    %c0_i32_0 = arith.constant 0 : i32
    return %arg0, %c0_i32 : i32, i32
  }
  func.func @transform_2(%arg0: i32, %arg1: i32) -> (i32, i32) {
    %c0_i32 = arith.constant 0 : i32
    %c0_i32_0 = arith.constant 0 : i32
    return %arg0, %c0_i32 : i32, i32
  }
  func.func @transform_3(%arg0: i32, %arg1: i32) -> (i32, i32) {
    %c0_i32 = arith.constant 0 : i32
    %c0_i32_0 = arith.constant 0 : i32
    return %arg0, %c0_i32 : i32, i32
  }
  func.func @transform_4(%arg0: i32, %arg1: i32) -> (i32, i32, i32) {
    %c0_i32 = arith.constant 0 : i32
    %c0_i32_0 = arith.constant 0 : i32
    %c0_i32_1 = arith.constant 0 : i32
    %c0_i32_2 = arith.constant 0 : i32
    return %c0_i32, %c0_i32_0, %c0_i32_1 : i32, i32, i32
  }
  func.func @transform_5(%arg0: i32, %arg1: i32) -> (i32, i32) {
    %c0_i32 = arith.constant 0 : i32
    %c0_i32_0 = arith.constant 0 : i32
    %c0_i32_1 = arith.constant 0 : i32
    return %c0_i32, %c0_i32_0 : i32, i32
  }
  func.func @transform_6(%arg0: i32, %arg1: i32) -> (i32, i32, i32) {
    %c0_i32 = arith.constant 0 : i32
    %c0_i32_0 = arith.constant 0 : i32
    return %arg1, %arg0, %c0_i32 : i32, i32, i32
  }
  func.func @transform_7(%arg0: i32, %arg1: i32) -> (i32, i32, i32) {
    %c0_i32 = arith.constant 0 : i32
    %c0_i32_0 = arith.constant 0 : i32
    return %arg1, %arg0, %c0_i32 : i32, i32, i32
  }
  func.func @transform_8(%arg0: i32, %arg1: i32) -> (i32, i32) {
    %c0_i32 = arith.constant 0 : i32
    %c0_i32_0 = arith.constant 0 : i32
    return %arg0, %c0_i32 : i32, i32
  }
  func.func @transform_9(%arg0: i32, %arg1: i32) -> (i32, i32) {
    %c0_i32 = arith.constant 0 : i32
    %c0_i32_0 = arith.constant 0 : i32
    return %arg0, %c0_i32 : i32, i32
  }
  func.func @transform_10(%arg0: i32, %arg1: i32) -> (i32, i32) {
    %c0_i32 = arith.constant 0 : i32
    %c0_i32_0 = arith.constant 0 : i32
    return %arg0, %c0_i32 : i32, i32
  }
}

</mosaic_0001>

<bundles_post_ra>
// kernel: tpu_custom_call.1
= control target key start
LH: loop header
LB: loop body
LE: loop exit
PB: predicated region body
PF: predicated region fallthrough
CT: control target
= control target key end

     0   :  { %s2708_s0 = inlined_call_operand.vmem [shape: f32[6,128,64], index: 0, kind: input, shape index: {}]   ;;  %s2709_s1 = inlined_call_operand.vmem [shape: f32[128,64], index: 1, kind: input, shape index: {}, may-alias: {1,8}]   ;;  %s2710_s2 = inlined_call_operand.vmem [shape: f32[128,64], index: 2, kind: input, shape index: {}, may-alias: {2,9}]   ;;  %s2711_s3 = inlined_call_operand.vmem [shape: f32[128,128], index: 3, kind: input, shape index: {}, may-alias: {3,10}]   ;;  %s2712_s4 = inlined_call_operand.vmem [shape: f32[3,64,128], index: 4, kind: input, shape index: {}]   ;;  %s2713_s5 = inlined_call_operand.vmem [shape: f32[1,128], index: 5, kind: input, shape index: {}]   ;;  %s2714_s6 = inlined_call_operand.hbm [shape: f32[6,128,128], index: 6, kind: output, shape index: {0}]   ;;  %s2715_s7 = inlined_call_operand.hbm [shape: f32[6,128,128], index: 7, kind: output, shape index: {1}]   ;;  %s2716_s8 = inlined_call_operand.vmem [shape: f32[128,64], index: 8, kind: output, shape index: {2}, may-alias: {1,8}]   ;;  %s2717_s9 = inlined_call_operand.vmem [shape: f32[128,64], index: 9, kind: output, shape index: {3}, may-alias: {2,9}]   ;;  %s2718_s10 = inlined_call_operand.vmem [shape: f32[128,128], index: 10, kind: output, shape index: {4}, may-alias: {3,10}]  }
   0x1   :  { %2730 = sst [smem:[#allocation18_spill]] %s2709_s1 }
   0x2   :  { %2731 = sst [smem:[#allocation19_spill]] %s2715_s7 }
   0x3   :  { %16 = vsyncpa [#allocation3], 0 }
   0x4   :  { %18 = vsyncpa [#allocation3 + $0x1], 0 }
   0x5   :  { %19 = vsyncpa [#allocation5], 0 }
   0x6   :  { %21 = vsyncpa [#allocation5 + $0x1], 0  ;;  %s2125_s13 = smov 0   ;;  %s2127_s14 = smov 0  }
   0x7   :  { %s2129_s15 = smov 0   ;;  %s2131_s16 = smov 0  }
   0x8   :  { %s2133_s17 = smov 0   ;;  %s2135_s18 = smov 0  }
   0x9   :  { %s2137_s19 = smov 0   ;;  %s2139_s20 = smov 0  }
   0xa LB: > { %2732 = sst [smem:[#allocation8_spill]] %s2035_s13  ;;  %s1540_s21 = sadd.s32 4294967295, %s2063_s20   ;;  %s2063_s20 = sphi %s2139_s20, %s27_s20   ;;  %s2059_s19 = sphi %s2137_s19, %s2755_s19   ;;  %s2055_s18 = sphi %s2135_s18, %s2754_s18   ;;  %s2051_s17 = sphi %s2133_s17, %s2753_s17   ;;  %s2047_s16 = sphi %s2131_s16, %s2752_s16   ;;  %s2043_s15 = sphi %s2129_s15, %s2751_s15   ;;  %s2039_s14 = sphi %s2127_s14, %s2750_s14   ;;  %s2035_s13 = sphi %s2125_s13, %s2749_s13  }
   0xb   : > { %2733 = sst [smem:[#allocation9_spill]] %s2039_s14  ;;  %s1541_s22 = sadd.s32 4294967294, %s2063_s20  }
   0xc   : > { %2734 = sst [smem:[#allocation10_spill]] %s2043_s15  ;;  %s36_s23 = sadd.s32 1, %s2055_s18 }
   0xd   : > { %2735 = sst [smem:[#allocation11_spill]] %s2055_s18  ;;  %p37_p0 = scmp.ge.s32.totalorder %s36_s23, 6 }
   0xe   : > { %2736 = sst [smem:[#allocation12_spill]] %s2059_s19  ;;  %s39_s24 = sadd.s32 1, %s2059_s19 }
   0xf   : > { %2737 = sst [smem:[#allocation13_spill]] %s2063_s20  ;;  %p206_p1 = scmp.ne.s32.totalorder %s2043_s15, %s2039_s14 }
  0x10   : > { %p207_p2 = scmp.eq.s32.totalorder %s1540_s21, 11  ;;  %s2757_s23 = smov (%p37_p0, %s36_s23), 0 }
  0x11   : > { %2738 = sst [smem:[#allocation14_spill]] %s2757_s23  ;;  %s2759_s24 = smov (!%p37_p0, %s39_s24), %s2059_s19 }
  0x12   : > { %s191_s25 = ssub.s32 %s2055_s18, %s2757_s23  ;;  %p2176_p3 = por %p207_p2, %p206_p1 }
  0x13   : > { %p41_p4 = scmp.ge.s32.totalorder %s2759_s24, 2  ;;  %p212_p5 = scmp.ne.s32.totalorder %s2039_s14, %s2035_s13 }
  0x14   : > { %p213_p6 = scmp.eq.s32.totalorder %s1541_s22, 11  ;;  %p1544_p7 = scmp.ge.s32.totalorder %s2063_s20, 1 }
  0x15   : > { %s2761_s24 = smov (%p41_p4, %s2759_s24), 0  ;;  %p383_p9 = scmp.lt.s32.totalorder %s2063_s20, 13 }
  0x16   : > { %2740 = sst [smem:[#allocation15_spill]] %s2761_s24  ;;  %p2185_p8 = por %p213_p6, %p212_p5 }
  0x17   : > { %s192_s28 = ssub.s32 %s2059_s19, %s2761_s24  ;;  %s196_s29 = sadd.s32 1, %s2043_s15 }
  0x18   : > { %s2741_s27 = scalar_select %p2185_p8, 1, 0 }
  0x19   : > { %s193_s30 = sor.u32 %s192_s28, %s191_s25  ;;  %p384_p10 = pnand %p1544_p7, %p383_p9 }
  0x1a   : > { %2742 = sst [smem:[#allocation16_spill]] %s2741_s27  ;;  %p194_p11 = scmp.eq.s32.totalorder %s193_s30, 0 }
  0x1b   : > { %387 = sbr.rel (%p384_p10) target bundleno = 377 (0x179), region = 44  ;;  %s2197_s12 = sand.u32 (!%p384_p10), 1, %s2039_s14  }
  0x1c   : > { %s2194_s11 = scalar_select %p194_p11, %s2043_s15, %s196_s29  }
  0x1d   : > { %s2200_s21 = sshll.u32 (!%p384_p10), %s2051_s17, 3  ;;  %s1545_s22 = sshll.u32 (!%p384_p10), %s2197_s12, 6 }
  0x1e   : > { %2743 = sst [smem:[#allocation17_spill]] %s2194_s11  ;;  %p461_p12 = scmp.lt.s32.totalorder (!%p384_p10), %s2047_s16, 5 }
  0x1f   : > { %p463_p13 = scmp.lt.s32.totalorder (!%p384_p10), %s2200_s21, 15  ;;  %s2744_s1 = sld [smem:[#allocation18_spill]] (!%p384_p10) }
  0x20   : > { %s2240_s27 = scalar_lea.vmem (!%p384_p10), [#allocation2], %s1545_s22  ;;  %s2242_s7 = scalar_lea.vmem (!%p384_p10), [#allocation4], %s1545_s22 }
  0x21   : > { %p1562_p0 = scmp.ne.s32.totalorder (!%p384_p10), %s2047_s16, 0 }
  0x22   : > { %s462_s24 = scalar_select %p461_p12, %s2047_s16, 5 }
  0x23   : > { %s464_s28 = scalar_select %p463_p13, %s2200_s21, 15 }
  0x24   : > { %s1548_s25 = sshll.u32 %s462_s24, 4  ;;  %511 = sbr.rel (%p1562_p0) target bundleno = 54 (0x36), region = 48  ;;  %vm520_vm0 = vcmask (!%p1562_p0), 523264  }
  0x25   : > { %s466_s29 = sadd.s32 %s1548_s25, %s464_s28  ;;  %s1551_s30 = sshll.u32 %s464_s28, 3 }
  0x26   : > { %s1549_s23 = sshll.u32 %s466_s29, 3  ;;  %s474_s11 = scalar_lea.vmem %s2744_s1, %s1551_s30 }
  0x27   : > { %s2213_s17 = scalar_lea.vmem %s2708_s0, %s1549_s23  ;;  %s2218_s20 = scalar_lea.vmem %s2710_s2, %s1551_s30  ;;  %v512_v0 = vld [vmem:[%s474_s11] sm:$0xff] (!%p1562_p0)  ;;  %v513_v1 = vld [vmem:[%s474_s11 + $0x8] sm:$0xff] (!%p1562_p0)  ;;  %v514_v2 = vld [vmem:[%s474_s11 + $0x10] sm:$0xff] (!%p1562_p0) }
  0x28   : > { %s2223_s25 = scalar_lea.vmem %s2711_s3, %s1551_s30  ;;  %s2228_s18 = scalar_lea.vmem %s2716_s8, %s1551_s30  ;;  %v515_v3 = vld [vmem:[%s474_s11 + $0x18] sm:$0xff] (!%p1562_p0)  ;;  %v516_v4 = vld [vmem:[%s474_s11 + $0x20] sm:$0xff] (!%p1562_p0)  ;;  %v517_v5 = vld [vmem:[%s474_s11 + $0x28] sm:$0xff] (!%p1562_p0) }
  0x29   : > { %s2233_s14 = scalar_lea.vmem %s2717_s9, %s1551_s30  ;;  %s2238_s13 = scalar_lea.vmem %s2718_s10, %s1551_s30  ;;  %v518_v6 = vld [vmem:[%s474_s11 + $0x30] sm:$0xff] (!%p1562_p0)  ;;  %v519_v7 = vld [vmem:[%s474_s11 + $0x38] sm:$0xff] (!%p1562_p0)  ;;  %v529_v8 = vld [vmem:[%s2218_s20] sm:$0xff] (!%p1562_p0) }
  0x2a   : > { %521 = vst.msk [vmem:[%s2228_s18] sm:$0xff] (!%p1562_p0), %vm520_vm0, %v512_v0  ;;  %522 = vst.msk [vmem:[%s2228_s18 + $0x8] sm:$0xff] (!%p1562_p0), %vm520_vm0, %v513_v1  ;;  %v530_v9 = vld [vmem:[%s2218_s20 + $0x8] sm:$0xff] (!%p1562_p0)  ;;  %v531_v10 = vld [vmem:[%s2218_s20 + $0x10] sm:$0xff] (!%p1562_p0) }
  0x2b   : > { %523 = vst.msk [vmem:[%s2228_s18 + $0x10] sm:$0xff] %vm520_vm0, %v514_v2  ;;  %524 = vst.msk [vmem:[%s2228_s18 + $0x18] sm:$0xff] %vm520_vm0, %v515_v3  ;;  %v532_v11 = vld [vmem:[%s2218_s20 + $0x18] sm:$0xff]  ;;  %v533_v12 = vld [vmem:[%s2218_s20 + $0x20] sm:$0xff] }
  0x2c   : > { %525 = vst.msk [vmem:[%s2228_s18 + $0x20] sm:$0xff] %vm520_vm0, %v516_v4  ;;  %526 = vst.msk [vmem:[%s2228_s18 + $0x28] sm:$0xff] %vm520_vm0, %v517_v5  ;;  %v534_v13 = vld [vmem:[%s2218_s20 + $0x28] sm:$0xff]  ;;  %v535_v14 = vld [vmem:[%s2218_s20 + $0x30] sm:$0xff] }
  0x2d   : > { %527 = vst.msk [vmem:[%s2228_s18 + $0x30] sm:$0xff] %vm520_vm0, %v518_v6  ;;  %528 = vst.msk [vmem:[%s2228_s18 + $0x38] sm:$0xff] %vm520_vm0, %v519_v7  ;;  %v536_v15 = vld [vmem:[%s2218_s20 + $0x38] sm:$0xff]  ;;  %v545_v16 = vld [vmem:[%s2223_s25] sm:$0xff] }
  0x2e   : > { %v546_v17 = vld [vmem:[%s2223_s25 + $0x8] sm:$0xff]  ;;  %537 = vst.msk [vmem:[%s2233_s14] sm:$0xff] %vm520_vm0, %v529_v8  ;;  %538 = vst.msk [vmem:[%s2233_s14 + $0x8] sm:$0xff] %vm520_vm0, %v530_v9  ;;  %v547_v18 = vld [vmem:[%s2223_s25 + $0x10] sm:$0xff] }
  0x2f   : > { %539 = vst.msk [vmem:[%s2233_s14 + $0x10] sm:$0xff] %vm520_vm0, %v531_v10  ;;  %540 = vst.msk [vmem:[%s2233_s14 + $0x18] sm:$0xff] %vm520_vm0, %v532_v11  ;;  %v548_v19 = vld [vmem:[%s2223_s25 + $0x18] sm:$0xff]  ;;  %v549_v20 = vld [vmem:[%s2223_s25 + $0x20] sm:$0xff] }
  0x30   : > { %541 = vst.msk [vmem:[%s2233_s14 + $0x20] sm:$0xff] %vm520_vm0, %v533_v12  ;;  %542 = vst.msk [vmem:[%s2233_s14 + $0x28] sm:$0xff] %vm520_vm0, %v534_v13  ;;  %v550_v21 = vld [vmem:[%s2223_s25 + $0x28] sm:$0xff]  ;;  %v551_v22 = vld [vmem:[%s2223_s25 + $0x30] sm:$0xff] }
  0x31   : > { %543 = vst.msk [vmem:[%s2233_s14 + $0x30] sm:$0xff] %vm520_vm0, %v535_v14  ;;  %544 = vst.msk [vmem:[%s2233_s14 + $0x38] sm:$0xff] %vm520_vm0, %v536_v15  ;;  %v552_v23 = vld [vmem:[%s2223_s25 + $0x38] sm:$0xff] }
  0x32   : > { %553 = vst [vmem:[%s2238_s13] sm:$0xff] %v545_v16  ;;  %554 = vst [vmem:[%s2238_s13 + $0x8] sm:$0xff] %v546_v17 }
  0x33   : > { %555 = vst [vmem:[%s2238_s13 + $0x10] sm:$0xff] %v547_v18  ;;  %556 = vst [vmem:[%s2238_s13 + $0x18] sm:$0xff] %v548_v19 }
  0x34   : > { %557 = vst [vmem:[%s2238_s13 + $0x20] sm:$0xff] %v549_v20  ;;  %558 = vst [vmem:[%s2238_s13 + $0x28] sm:$0xff] %v550_v21 }
  0x35   : > { %559 = vst [vmem:[%s2238_s13 + $0x30] sm:$0xff] %v551_v22  ;;  %560 = vst [vmem:[%s2238_s13 + $0x38] sm:$0xff] %v552_v23 }
  0x36 PF: > { %v1563_v24 = vld [vmem:[%s2712_s4 + $0x40] sm:$0xff]  ;;  %v1564_v25 = vld [vmem:[%s2712_s4 + $0x48] sm:$0xff]  ;;  %v1565_v29 = vld [vmem:[%s2712_s4 + $0x50] sm:$0xff]  ;;  %vm633_vm1 = vcmask 523264   ;;  %vm675_vm2 = vcmask 1046528   ;;  %vm942_vm3 = vcmask 1045504  }
  0x37   : > { %v650_v26 = vld [vmem:[%s2712_s4] sm:$0xff]  ;;  %v1754_v27 = vpack.c.bf16 %v1564_v25, %v1563_v24  ;;  %v651_v28 = vld [vmem:[%s2712_s4 + $0x8] sm:$0xff]  ;;  %v1566_v30 = vld [vmem:[%s2712_s4 + $0x58] sm:$0xff]  ;;  %s1615_s23 = sshll.u32 %s2047_s16, 4  ;;  %s1282_s1 = sshll.u32 %s2240_s27, 4  ;;  %s2601_s1 = int_to_ptr.vmem [resolvable:$true] %s1282_s1 }
  0x38   : > { %v1770_v31 = vpack.c.bf16 %v651_v28, %v650_v26  ;;  %v1758_v32 = vpack.c.bf16 %v1566_v30, %v1565_v29  ;;  %v652_v33 = vld [vmem:[%s2712_s4 + $0x10] sm:$0xff]  ;;  %v653_v34 = vld [vmem:[%s2712_s4 + $0x18] sm:$0xff]  ;;  %v1567_v35 = vld [vmem:[%s2712_s4 + $0x60] sm:$0xff]  ;;  %s2577_s16 = sadd.s32 %s1615_s23, %s2200_s21  ;;  %s1247_s30 = scalar_lea.sflag [#allocation3], %s2197_s12 }
  0x39   : > { %1755 = vmatprep.subr.bf16.mxu1 %v1754_v27  ;;  %v1774_v36 = vpack.c.bf16 %v653_v34, %v652_v33  ;;  %v1568_v37 = vld [vmem:[%s2712_s4 + $0x68] sm:$0xff]  ;;  %v654_v38 = vld [vmem:[%s2712_s4 + $0x20] sm:$0xff]  ;;  %v1569_v40 = vld [vmem:[%s2712_s4 + $0x70] sm:$0xff]  ;;  %s1616_s21 = sshll.u32 %s2577_s16, 7  ;;  %s1937_s24 = scalar_lea.vmem %s2601_s1, 1024 }
  0x3a   : > { %v655_v39 = vld [vmem:[%s2712_s4 + $0x28] sm:$0xff]  ;;  %1771 = vmatprep.subr.bf16.mxu0 %v1770_v31  ;;  %1757 = vmatpush3.bf16.msra.mxu1 %v1754_v27  ;;  %v1570_v41 = vld [vmem:[%s2712_s4 + $0x78] sm:$0xff]  ;;  %v656_v42 = vld [vmem:[%s2712_s4 + $0x30] sm:$0xff]  ;;  %v1762_v43 = vpack.c.bf16 %v1568_v37, %v1567_v35  ;;  %s2599_s22 = scalar_lea.hbm %s2714_s6, %s1616_s21  ;;  %p1938_p1 = scmp.ne.s32.totalorder %s2601_s1, %s1937_s24 }
  0x3b   : > { %1773 = vmatpush3.bf16.msra.mxu0 %v1770_v31  ;;  %1759 = vmatprep.subr.bf16.mxu1 %v1758_v32  ;;  %v657_v44 = vld [vmem:[%s2712_s4 + $0x38] sm:$0xff]  ;;  %v1778_v47 = vpack.c.bf16 %v655_v39, %v654_v38  ;;  %v569_v48 = vld [vmem:[%s2233_s14] sm:$0xff]  ;;  %v570_v49 = vld [vmem:[%s2233_s14 + $0x8] sm:$0xff]  ;;  %v1766_v56 = vpack.c.bf16 %v1570_v41, %v1569_v40  ;;  %s2066_s25 = smov [#allocation2]  }
  0x3c   : > { %v561_v45 = vld [vmem:[%s2228_s18] sm:$0xff]  ;;  %v562_v46 = vld [vmem:[%s2228_s18 + $0x8] sm:$0xff]  ;;  %1775 = vmatprep.subr.bf16.mxu0 %v1774_v36  ;;  %v585_v52 = vmul.f32 10.0, %v569_v48  ;;  %v586_v53 = vmul.f32 10.0, %v570_v49  ;;  %v601_v54 = vmul.f32 0.8, %v569_v48  ;;  %v2353_v57 = vpack.c.bf16 %v657_v44, %v656_v42  ;;  %p1939_p2 = pnand %p1938_p1, %p2176_p3 }
  0x3d   : > { %v577_v50 = vmul.f32 0.9, %v561_v45  ;;  %v578_v51 = vmul.f32 0.9, %v562_v46  ;;  %v602_v55 = vmul.f32 0.8, %v570_v49 }
  0x3e   : > { %1761 = vmatpush3.bf16.msra.mxu1 %v1758_v32  ;;  %v609_v58 = vld [vmem:[%s2213_s17] sm:$0xff]  ;;  %v610_v59 = vld [vmem:[%s2213_s17 + $0x8] sm:$0xff]  ;;  %v563_v60 = vld [vmem:[%s2228_s18 + $0x10] sm:$0xff]  ;;  %p1940_p4 = pneg %p1939_p2  ;;  %s1941_s28 = sshll.u32 %s2066_s25, 4  ;;  %s1942_s28 = int_to_ptr.vmem [resolvable:$false] %s1941_s28 }
  0x3f   : > { %1777 = vmatpush3.bf16.msra.mxu0 %v1774_v36  ;;  %1763 = vmatprep.subr.bf16.mxu1 %v1762_v43  ;;  %v2358_v61 = vadd.f32 %v585_v52, %v577_v50  ;;  %v2360_v62 = vadd.f32 %v586_v53, %v578_v51  ;;  %v617_v63 = vmul.f32 5.0, %v609_v58  ;;  %v618_v0 = vmul.f32 5.0, %v610_v59  ;;  %v571_v1 = vld [vmem:[%s2233_s14 + $0x10] sm:$0xff]  ;;  %v1587_v3 = vld [vmem:[%s2712_s4 + $0x80] sm:$0xff]  ;;  %v1588_v12 = vld [vmem:[%s2712_s4 + $0x88] sm:$0xff]  ;;  %p1944_p5 = scmp.lt.s32.totalorder %s2601_s1, %s1942_s28 }
  0x40   : > { %v611_v2 = vld [vmem:[%s2213_s17 + $0x10] sm:$0xff]  ;;  %1779 = vmatprep.subr.bf16.mxu0 %v1778_v47  ;;  %v579_v4 = vmul.f32 0.9, %v563_v60  ;;  %v587_v5 = vmul.f32 10.0, %v571_v1  ;;  %v603_v6 = vmul.f32 0.8, %v571_v1  ;;  %v2384_v17 = vpack.c.bf16 %v1588_v12, %v1587_v3 }
  0x41   : > { %v619_v7 = vmul.f32 5.0, %v611_v2  ;;  %v625_v8 = vadd.f32 %v617_v63, %v601_v54  ;;  %v626_v9 = vadd.f32 %v618_v0, %v602_v55  ;;  %634 = vst.msk [vmem:[%s2228_s18] sm:$0xff] %vm633_vm1, %v2358_v61  ;;  %635 = vst.msk [vmem:[%s2228_s18 + $0x8] sm:$0xff] %vm633_vm1, %v2360_v62  ;;  %v676_v10 = vrot.slane %v2358_v61, 1  ;;  %1714 = vmatprep.mubr.msk.f32.mxu0 %vm633_vm1, %v2358_v61  ;;  %v564_v13 = vld [vmem:[%s2228_s18 + $0x18] sm:$0xff]  ;;  %v565_v20 = vld [vmem:[%s2228_s18 + $0x20] sm:$0xff] }
  0x42   : > { %v677_v11 = vrot.slane %v2360_v62, 1  ;;  %v572_v14 = vld [vmem:[%s2233_s14 + $0x18] sm:$0xff]  ;;  %1765 = vmatpush3.bf16.msra.mxu1 %v1762_v43  ;;  %v2382_v15 = vadd.f32 %v587_v5, %v579_v4  ;;  %v580_v18 = vmul.f32 0.9, %v564_v13  ;;  %v573_v21 = vld [vmem:[%s2233_s14 + $0x20] sm:$0xff]  ;;  %v1589_v27 = vld [vmem:[%s2712_s4 + $0x90] sm:$0xff] }
  0x43   : > { %v627_v16 = vadd.f32 %v619_v7, %v603_v6  ;;  %v612_v19 = vld [vmem:[%s2213_s17 + $0x18] sm:$0xff]  ;;  %1781 = vmatpush3.bf16.msra.mxu0 %v1778_v47  ;;  %1767 = vmatprep.subr.bf16.mxu1 %v1766_v56  ;;  %642 = vst.msk [vmem:[%s2233_s14] sm:$0xff] %vm633_vm1, %v625_v8  ;;  %643 = vst.msk [vmem:[%s2233_s14 + $0x8] sm:$0xff] %vm633_vm1, %v626_v9  ;;  %v588_v23 = vmul.f32 10.0, %v572_v14  ;;  %v604_v24 = vmul.f32 0.8, %v572_v14 }
  0x44   : > { %v678_v22 = vsel %vm675_vm2, %v676_v10, %v677_v11  ;;  %v620_v25 = vmul.f32 5.0, %v612_v19  ;;  %v613_v26 = vld [vmem:[%s2213_s17 + $0x20] sm:$0xff]  ;;  %1783 = vmatprep.subr.bf16.mxu0 %v2353_v57  ;;  %636 = vst.msk [vmem:[%s2228_s18 + $0x10] sm:$0xff] %vm633_vm1, %v2382_v15  ;;  %v679_v28 = vrot.slane %v2382_v15, 1  ;;  %v581_v29 = vmul.f32 0.9, %v565_v20 }
  0x45   : > { %1686 = vmatprep.mubr.msk.f32.mxu1 %vm633_vm1, %v678_v22  ;;  %644 = vst.msk [vmem:[%s2233_s14 + $0x10] sm:$0xff] %vm633_vm1, %v627_v16  ;;  %v589_v30 = vmul.f32 10.0, %v573_v21  ;;  %v605_v31 = vmul.f32 0.8, %v573_v21  ;;  %v2406_v32 = vadd.f32 %v588_v23, %v580_v18  ;;  %v621_v34 = vmul.f32 5.0, %v613_v26  ;;  %v1590_v35 = vld [vmem:[%s2712_s4 + $0x98] sm:$0xff] }
  0x46   : > { %v628_v33 = vadd.f32 %v620_v25, %v604_v24  ;;  %v566_v36 = vld [vmem:[%s2228_s18 + $0x28] sm:$0xff]  ;;  %1769 = vmatpush3.bf16.msra.mxu1 %v1766_v56  ;;  %v680_v38 = vsel %vm675_vm2, %v677_v11, %v679_v28  ;;  %v1790_v40 = vpack.c.bf16 %v1590_v35, %v1589_v27  ;;  %v567_v43 = vld [vmem:[%s2228_s18 + $0x30] sm:$0xff]  ;;  %v1591_v50 = vld [vmem:[%s2712_s4 + $0xa0] sm:$0xff]  ;;  %v943_v21 = vrot.slane %v2358_v61, 2 }
  0x47   : > { %v574_v37 = vld [vmem:[%s2233_s14 + $0x28] sm:$0xff]  ;;  %v2414_v39 = vadd.f32 %v589_v30, %v581_v29  ;;  %v582_v41 = vmul.f32 0.9, %v566_v36  ;;  %v575_v44 = vld [vmem:[%s2233_s14 + $0x30] sm:$0xff]  ;;  %1785 = vmatpush3.bf16.msra.mxu0 %v2353_v57  ;;  %1802 = vmatprep.subr.bf16.mxu1 %v2384_v17  ;;  %637 = vst.msk [vmem:[%s2228_s18 + $0x18] sm:$0xff] %vm633_vm1, %v2406_v32  ;;  %v681_v45 = vrot.slane %v2406_v32, 1  ;;  %v629_v46 = vadd.f32 %v621_v34, %v605_v31 }
  0x48   : > { %v614_v42 = vld [vmem:[%s2213_s17 + $0x28] sm:$0xff]  ;;  %645 = vst.msk [vmem:[%s2233_s14 + $0x18] sm:$0xff] %vm633_vm1, %v628_v33  ;;  %v590_v47 = vmul.f32 10.0, %v574_v37  ;;  %v606_v48 = vmul.f32 0.8, %v574_v37  ;;  %v615_v49 = vld [vmem:[%s2213_s17 + $0x30] sm:$0xff]  ;;  %1787 = vmatprep.subr.bf16.mxu0 %v2384_v17 }
  0x49   : > { %638 = vst.msk [vmem:[%s2228_s18 + $0x20] sm:$0xff] %vm633_vm1, %v2414_v39  ;;  %v683_v51 = vrot.slane %v2414_v39, 1  ;;  %v622_v52 = vmul.f32 5.0, %v614_v42  ;;  %v583_v53 = vmul.f32 0.9, %v567_v43  ;;  %v591_v54 = vmul.f32 10.0, %v575_v44  ;;  %1687 = vmatmul.mubr.msk.f32.vlgmr.msra.gmra.mrb[0].mxu1 %vm633_vm1, %v680_v38 }
  0x4a   : > { %v1592_v55 = vld [vmem:[%s2712_s4 + $0xa8] sm:$0xff]  ;;  %v682_v56 = vsel %vm675_vm2, %v679_v28, %v681_v45  ;;  %646 = vst.msk [vmem:[%s2233_s14 + $0x20] sm:$0xff] %vm633_vm1, %v629_v46  ;;  %v2443_v57 = vadd.f32 %v590_v47, %v582_v41  ;;  %v607_v58 = vmul.f32 0.8, %v575_v44  ;;  %v623_v59 = vmul.f32 5.0, %v615_v49  ;;  %v568_v60 = vld [vmem:[%s2228_s18 + $0x38] sm:$0xff]  ;;  %1715 = vmatmul.mubr.msk.f32.vlgmr.msra.gmra.mrb[0].mxu0 %vm633_vm1, %v2360_v62  ;;  %1806 = vmatpush3.bf16.msra.mxu1 %v2384_v17 }
  0x4b   : > { %v576_v63 = vld [vmem:[%s2233_s14 + $0x38] sm:$0xff]  ;;  %v684_v1 = vsel %vm675_vm2, %v681_v45, %v683_v51  ;;  %v630_v2 = vadd.f32 %v622_v52, %v606_v48  ;;  %v2452_v3 = vadd.f32 %v591_v54, %v583_v53  ;;  %v584_v4 = vmul.f32 0.9, %v568_v60  ;;  %1789 = vmatpush3.bf16.msra.mxu0 %v2384_v17  ;;  %1689 = vmatprep.mubr.msk.f32.mxu1 %vm633_vm1, %v682_v56  ;;  %v1593_v14 = vld [vmem:[%s2712_s4 + $0xb0] sm:$0xff]  ;;  %v1107_v49 = vld [vmem:[%s2238_s13 + $0x28] sm:$0xff] }
  0x4c   : > { %v616_v0 = vld [vmem:[%s2213_s17 + $0x38] sm:$0xff]  ;;  %639 = vst.msk [vmem:[%s2228_s18 + $0x28] sm:$0xff] %vm633_vm1, %v2443_v57  ;;  %v685_v5 = vrot.slane %v2443_v57, 1  ;;  %v631_v6 = vadd.f32 %v623_v59, %v607_v58  ;;  %v592_v7 = vmul.f32 10.0, %v576_v63  ;;  %1717 = vmatprep.mubr.msk.f32.mxu0 %vm633_vm1, %v2382_v15  ;;  %1791 = vmatprep.subr.bf16.mxu0 %v1790_v40  ;;  %v1794_v9 = vpack.c.bf16 %v1592_v55, %v1591_v50  ;;  %v1106_v52 = vld [vmem:[%s2238_s13 + $0x20] sm:$0xff]  ;;  %s1943_s17 = scalar_lea.vmem %s1942_s28, 2048 }
  0x4d   : > { %647 = vst.msk [vmem:[%s2233_s14 + $0x28] sm:$0xff] %vm633_vm1, %v630_v2  ;;  %640 = vst.msk [vmem:[%s2228_s18 + $0x30] sm:$0xff] %vm633_vm1, %v2452_v3  ;;  %v687_v8 = vrot.slane %v2452_v3, 1  ;;  %v608_v10 = vmul.f32 0.8, %v576_v63  ;;  %v624_v11 = vmul.f32 5.0, %v616_v0  ;;  %1690 = vmatmul.mubr.msk.f32.gmra.mrb[2].mxu1 %vm633_vm1, %v684_v1  ;;  %1803 = vmatprep.subr.bf16.mxu1 %v1790_v40  ;;  %p1945_p6 = scmp.lt.s32.totalorder %s1943_s17, %s1937_s24 }
  0x4e   : > { %v686_v12 = vsel %vm675_vm2, %v683_v51, %v685_v5  ;;  %648 = vst.msk [vmem:[%s2233_s14 + $0x30] sm:$0xff] %vm633_vm1, %v631_v6  ;;  %v600_v13 = vadd.f32 %v592_v7, %v584_v4  ;;  %v1594_v16 = vld [vmem:[%s2712_s4 + $0xb8] sm:$0xff]  ;;  %1718 = vmatmul.mubr.msk.f32.gmra.mrb[2].mxu0 %vm633_vm1, %v2406_v32  ;;  %1807 = vmatpush3.bf16.msra.mxu1 %v1790_v40  ;;  %v944_v22 = vrot.slane %v2360_v62, 2  ;;  %v950_v24 = vrot.slane %v2414_v39, 2  ;;  %v1103_v51 = vld [vmem:[%s2238_s13 + $0x8] sm:$0xff]  ;;  %v1102_v55 = vld [vmem:[%s2238_s13] sm:$0xff] }
  0x4f   : > { %v688_v17 = vsel %vm675_vm2, %v685_v5, %v687_v8  ;;  %v632_v18 = vadd.f32 %v624_v11, %v608_v10  ;;  %1793 = vmatpush3.bf16.msra.mxu0 %v1790_v40  ;;  %1692 = vmatprep.mubr.msk.f32.mxu1 %vm633_vm1, %v686_v12  ;;  %v1798_v20 = vpack.c.bf16 %v1594_v16, %v1593_v14  ;;  %v952_v25 = vrot.slane %v2443_v57, 2  ;;  %v2527_v53 = vld [vmem:[%s2713_s5] ss:$0 sm:$0xff]  ;;  %v1105_v60 = vld [vmem:[%s2238_s13 + $0x18] sm:$0xff]  ;;  %v1108_v5 = vld [vmem:[%s2238_s13 + $0x30] sm:$0xff]  ;;  %p1946_p7 = por %p1945_p6, %p1944_p5 }
  0x50   : > { %641 = vst.msk [vmem:[%s2228_s18 + $0x38] sm:$0xff] %vm633_vm1, %v600_v13  ;;  %v689_v19 = vrot.slane %v600_v13, 1  ;;  %1720 = vmatprep.mubr.msk.f32.mxu0 %vm633_vm1, %v2414_v39  ;;  %1795 = vmatprep.subr.bf16.mxu0 %v1794_v9  ;;  %v954_v26 = vrot.slane %v2452_v3, 2  ;;  %v946_v61 = vrot.slane %v2382_v15, 2  ;;  %v956_v62 = vrot.slane %v600_v13, 2 }
  0x51   : > { %649 = vst.msk [vmem:[%s2233_s14 + $0x38] sm:$0xff] %vm633_vm1, %v632_v18  ;;  %1693 = vmatmul.mubr.msk.f32.gmra.mrb[4].mxu1 %vm633_vm1, %v688_v17  ;;  %1804 = vmatprep.subr.bf16.mxu1 %v1794_v9  ;;  %v945_v27 = vsel %vm942_vm3, %v943_v21, %v944_v22  ;;  %v948_v28 = vrot.slane %v2406_v32, 2  ;;  %v953_v29 = vsel %vm942_vm3, %v950_v24, %v952_v25  ;;  %v1115_v58 = vmul.f32 0.5, %v1107_v49  ;;  %v1109_v63 = vld [vmem:[%s2238_s13 + $0x38] sm:$0x3f]  ;;  %p1947_p9 = pnand %p1946_p7, %p1940_p4 }
  0x52   : > { %v690_v23 = vsel %vm675_vm2, %v687_v8, %v689_v19  ;;  %1721 = vmatmul.mubr.msk.f32.gmra.mrb[4].mxu0 %vm633_vm1, %v2443_v57  ;;  %1808 = vmatpush3.bf16.msra.mxu1 %v1794_v9  ;;  %v955_v30 = vsel %vm942_vm3, %v952_v25, %v954_v26  ;;  %v947_v15 = vsel %vm942_vm3, %v944_v22, %v946_v61  ;;  %v1111_v1 = vmul.f32 0.5, %v1103_v51 }
  0x53   : > { %1797 = vmatpush3.bf16.msra.mxu0 %v1794_v9  ;;  %1695 = vmatprep.mubr.msk.f32.mxu1 %vm633_vm1, %v690_v23  ;;  %v957_v31 = vsel %vm942_vm3, %v954_v26, %v956_v62  ;;  %v949_v32 = vsel %vm942_vm3, %v946_v61, %v948_v28  ;;  %v951_v33 = vsel %vm942_vm3, %v948_v28, %v950_v24  ;;  %v2532_v4 = vmul.f32 0.5, %v1106_v52 }
  0x54   : > { %1723 = vmatprep.mubr.msk.f32.mxu0 %vm633_vm1, %v2452_v3  ;;  %1799 = vmatprep.subr.bf16.mxu0 %v1798_v20  ;;  %v1110_v8 = vmul.f32 0.5, %v1102_v55  ;;  %v2538_v11 = vmul.f32 0.5, %v1105_v60 }
  0x55   : > { %1696 = vmatmul.mubr.msk.f32.gmra.mrb[6].mxu1 %vm633_vm1, %v689_v19  ;;  %1805 = vmatprep.subr.bf16.mxu1 %v1798_v20 }
  0x56   : > { %1724 = vmatmul.mubr.msk.f32.gmra.mrb[6].mxu0 %vm633_vm1, %v600_v13  ;;  %1809 = vmatpush3.bf16.msra.mxu1 %v1798_v20  ;;  %v2540_v13 = vmul.f32 0.5, %v1109_v63 }
  0x57   : > { %1801 = vmatpush3.bf16.msra.mxu0 %v1798_v20  ;;  %1742 = vmatprep.mubr.msk.f32.mxu0 %vm633_vm1, %v945_v27  ;;  %v2543_v20 = vmul.f32 0.5, %v1108_v5  ;;  %v2065_v27 = vmov 0.0  }
  0x58   : > { %1748 = vmatprep.mubr.msk.f32.mxu1 %vm633_vm1, %v953_v29 }
  0x59   : > { %1749 = vmatmul.mubr.msk.f32.vlgmr.msra.gmra.mrb[8].mxu1 %vm633_vm1, %v955_v30 }
  0x5a   : > { %1743 = vmatmul.mubr.msk.f32.vlgmr.msra.gmra.mrb[0].mxu0 %vm633_vm1, %v947_v15  ;;  %1751 = vmatprep.mubr.msk.f32.mxu1 %vm633_vm1, %v957_v31 }
  0x5b   : > { %1745 = vmatprep.mubr.msk.f32.mxu0 %vm633_vm1, %v949_v32 }
  0x5d   : > { %1752 = vmatmul.mubr.msk.f32.gmra.mrb[10].mxu1 %vm633_vm1, %v956_v62 }
  0x5e   : > { %1746 = vmatmul.mubr.msk.f32.gmra.mrb[2].mxu0 %vm633_vm1, %v951_v33 }
 0x11c   : > { %v1688_v34 = vpop.f32.mrb[0].mxu1 }
 0x11d   : > { %v773_v35 = vpop.f32.mrb[1].mxu1 }
 0x120   : > { %v1691_v36 = vpop.f32.mrb[2].mxu1 }
 0x121   : > { %v2519_v37 = vpop.f32.mrb[3].mxu1 }
 0x124   : > { %v1694_v38 = vpop.f32.mrb[4].mxu1 }
 0x125   : > { %v1722_v39 = vpop.f32.mrb[4].mxu0  ;;  %v793_v40 = vpop.f32.mrb[5].mxu1 }
 0x126   : > { %v920_v41 = vadd.f32 %v1722_v39, %v1694_v38  ;;  %v914_v42 = vpop.f32.mrb[5].mxu0 }
 0x127   : > { %v915_v43 = vadd.f32 %v914_v42, %v793_v40 }
 0x128   : > { %v1697_v44 = vpop.f32.mrb[6].mxu1 }
 0x129   : > { %v1725_v45 = vpop.f32.mrb[6].mxu0  ;;  %v803_v46 = vpop.f32.mrb[7].mxu1 }
 0x12a   : > { %v930_v47 = vadd.f32 %v1725_v45, %v1697_v44  ;;  %v924_v48 = vpop.f32.mrb[7].mxu0 }
 0x12b   : > { %v925_v50 = vadd.f32 %v924_v48, %v803_v46  ;;  %v1104_v46 = vld [vmem:[%s2238_s13 + $0x10] sm:$0xff] }
 0x12c   : > { %v1750_v54 = vpop.f32.mrb[8].mxu1 }
 0x12d   : > { %v1744_v56 = vpop.f32.mrb[0].mxu0  ;;  %v1084_v57 = vadd.f32 %v1750_v54, %v920_v41  ;;  %v1060_v59 = vpop.f32.mrb[9].mxu1  ;;  %v1112_v54 = vmul.f32 0.5, %v1104_v46 }
 0x12e   : > { %v1810_v0 = vadd.f32 %v1744_v56, %v1688_v34  ;;  %v1040_v2 = vpop.f32.mrb[1].mxu0  ;;  %v1083_v3 = vadd.f32 %v1060_v59, %v915_v43 }
 0x12f   : > { %v1099_v6 = vadd.f32 %v2527_v53, %v1084_v57  ;;  %v1811_v7 = vadd.f32 %v1040_v2, %v773_v35 }
 0x130   : > { %v1095_v9 = vadd.f32 %v1810_v0, %v2527_v53  ;;  %v1098_v10 = vadd.f32 %v2527_v53, %v1083_v3  ;;  %v1753_v12 = vpop.f32.mrb[10].mxu1 }
 0x131   : > { %v1123_v14 = vsub.f32 %v1099_v6, %v1115_v58  ;;  %v1094_v16 = vadd.f32 %v1811_v7, %v2527_v53  ;;  %v1747_v17 = vpop.f32.mrb[2].mxu0  ;;  %v1086_v18 = vadd.f32 %v1753_v12, %v930_v47  ;;  %v1070_v19 = vpop.f32.mrb[11].mxu1 }
 0x132   : > { %v1119_v21 = vsub.f32 %v1095_v9, %v1111_v1  ;;  %v1122_v22 = vsub.f32 %v1098_v10, %v2532_v4  ;;  %v1812_v23 = vadd.f32 %v1747_v17, %v1691_v36  ;;  %v1050_v24 = vpop.f32.mrb[3].mxu0  ;;  %v1085_v25 = vadd.f32 %v1070_v19, %v925_v50 }
 0x133   : > { %vm1131_vm4 = vcmp.ge.f32.partialorder %v1123_v14, 1.0  ;;  %vm1147_vm5 = vcmp.le.f32.partialorder %v1123_v14, -1.0  ;;  %v1609_v26 = vmul.f32 -1.442695, %v1123_v14  ;;  %v1118_v61 = vsub.f32 %v1094_v16, %v1110_v8 }
 0x134   : > { %vm1127_vm6 = vcmp.ge.f32.partialorder %v1119_v21, 1.0  ;;  %vm1143_vm7 = vcmp.le.f32.partialorder %v1119_v21, -1.0  ;;  %v1605_v62 = vmul.f32 -1.442695, %v1119_v21  ;;  %v1139_v28 = vsel %vm1131_vm4, 1.0, %v2065_v27 }
 0x135   : > { %v1135_v29 = vsel %vm1127_vm6, 1.0, %v2065_v27  ;;  %v1151_v30 = vsel %vm1143_vm7, 1.0, %v2065_v27  ;;  %v1155_v15 = vsel %vm1147_vm5, 1.0, %v2065_v27  ;;  %1905 = vpow2.f32 %v1609_v26 }
 0x136   : > { %v1159_v31 = vsub.f32 %v1135_v29, %v1151_v30  ;;  %1907 = vpow2.f32 %v1605_v62  ;;  %v1163_v32 = vsub.f32 %v1139_v28, %v1155_v15  ;;  %vm1126_vm8 = vcmp.ge.f32.partialorder %v1118_v61, 1.0 }
 0x137   : > { %v1134_v33 = vsel %vm1126_vm8, 1.0, %v2065_v27  ;;  %vm1142_vm9 = vcmp.le.f32.partialorder %v1118_v61, -1.0  ;;  %v1604_v34 = vmul.f32 -1.442695, %v1118_v61  ;;  %vm1130_vm10 = vcmp.ge.f32.partialorder %v1122_v22, 1.0 }
 0x138   : > { %v1167_v35 = vadd.f32 %v1159_v31, %v1111_v1  ;;  %1183 = vst [vmem:[%s2240_s27 + $0x8] sm:$0xff] %v1159_v31  ;;  %v1171_v36 = vadd.f32 %v1163_v32, %v1115_v58  ;;  %1187 = vst [vmem:[%s2240_s27 + $0x28] sm:$0xff] %v1163_v32  ;;  %v1150_v38 = vsel %vm1142_vm9, 1.0, %v2065_v27  ;;  %v1138_v39 = vsel %vm1130_vm10, 1.0, %v2065_v27 }
 0x139   : > { %v1158_v40 = vsub.f32 %v1134_v33, %v1150_v38  ;;  %1909 = vpow2.f32 %v1604_v34  ;;  %vm1146_vm11 = vcmp.le.f32.partialorder %v1122_v22, -1.0  ;;  %v1608_v41 = vmul.f32 -1.442695, %v1122_v22 }
 0x13a   : > { %1175 = vst [vmem:[%s2238_s13 + $0x8] sm:$0xff] %v1167_v35  ;;  %1179 = vst [vmem:[%s2238_s13 + $0x28] sm:$0xff] %v1171_v36  ;;  %v1154_v42 = vsel %vm1146_vm11, 1.0, %v2065_v27  ;;  %v1097_v43 = vadd.f32 %v1812_v23, %v2527_v53  ;;  %v1101_v44 = vadd.f32 %v2527_v53, %v1086_v18  ;;  %v1813_v45 = vadd.f32 %v1050_v24, %v2519_v37 }
 0x13b   : > { %v1166_v47 = vadd.f32 %v1158_v40, %v1110_v8  ;;  %1182 = vst [vmem:[%s2240_s27] sm:$0xff] %v1158_v40  ;;  %v1162_v48 = vsub.f32 %v1138_v39, %v1154_v42  ;;  %1911 = vpow2.f32 %v1608_v41  ;;  %v1100_v49 = vadd.f32 %v2527_v53, %v1085_v25 }
 0x13c   : > { %v1121_v50 = vsub.f32 %v1097_v43, %v2538_v11  ;;  %v1125_v51 = vsub.f32 %v1101_v44, %v2540_v13  ;;  %v1096_v37 = vadd.f32 %v1813_v45, %v2527_v53 }
 0x13d   : > { %1174 = vst [vmem:[%s2238_s13] sm:$0xff] %v1166_v47  ;;  %v1170_v52 = vadd.f32 %v1162_v48, %v2532_v4  ;;  %1186 = vst [vmem:[%s2240_s27 + $0x20] sm:$0xff] %v1162_v48  ;;  %v1124_v55 = vsub.f32 %v1100_v49, %v2543_v20 }
 0x13e   : > { %vm1129_vm12 = vcmp.ge.f32.partialorder %v1121_v50, 1.0  ;;  %vm1145_vm13 = vcmp.le.f32.partialorder %v1121_v50, -1.0  ;;  %v1607_v56 = vmul.f32 -1.442695, %v1121_v50  ;;  %vm1133_vm14 = vcmp.ge.f32.partialorder %v1125_v51, 1.0 }
 0x13f   : > { %v1906_v57 = vpop.eup %1905  ;;  %1178 = vst [vmem:[%s2238_s13 + $0x20] sm:$0xff] %v1170_v52  ;;  %v1137_v58 = vsel %vm1129_vm12, 1.0, %v2065_v27  ;;  %v1153_v59 = vsel %vm1145_vm13, 1.0, %v2065_v27  ;;  %v1141_v60 = vsel %vm1133_vm14, 1.0, %v2065_v27  ;;  %vm1149_vm15 = vcmp.le.f32.partialorder %v1125_v51, -1.0 }
 0x140   : > { %v1908_v53 = vpop.eup %1907  ;;  %v1219_v63 = vadd.f32 1.0, %v1906_v57  ;;  %v1161_v0 = vsub.f32 %v1137_v58, %v1153_v59  ;;  %1913 = vpow2.f32 %v1607_v56  ;;  %v1157_v1 = vsel %vm1149_vm15, 1.0, %v2065_v27 }
 0x141   : > { %v1215_v2 = vadd.f32 1.0, %v1908_v53  ;;  %v1165_v3 = vsub.f32 %v1141_v60, %v1157_v1  ;;  %v1611_v4 = vmul.f32 -1.442695, %v1125_v51  ;;  %v1120_v5 = vsub.f32 %v1096_v37, %v1112_v54 }
 0x142   : > { %1915 = vrcp.f32 %v1219_v63  ;;  %v1169_v6 = vadd.f32 %v1161_v0, %v2538_v11  ;;  %1185 = vst [vmem:[%s2240_s27 + $0x18] sm:$0xff] %v1161_v0  ;;  %vm1132_vm0 = vcmp.ge.f32.partialorder %v1124_v55, 1.0  ;;  %vm1148_vm1 = vcmp.le.f32.partialorder %v1124_v55, -1.0 }
 0x143   : > { %v1910_v7 = vpop.eup %1909  ;;  %1917 = vrcp.f32 %v1215_v2  ;;  %v1173_v8 = vadd.f32 %v1165_v3, %v2540_v13  ;;  %1189 = vst [vmem:[%s2240_s27 + $0x38] sm:$0x3f] %v1165_v3  ;;  %vm1128_vm2 = vcmp.ge.f32.partialorder %v1120_v5, 1.0  ;;  %vm1144_vm3 = vcmp.le.f32.partialorder %v1120_v5, -1.0 }
 0x144   : > { %v1214_v9 = vadd.f32 1.0, %v1910_v7  ;;  %1177 = vst [vmem:[%s2238_s13 + $0x18] sm:$0xff] %v1169_v6  ;;  %1919 = vpow2.f32 %v1611_v4  ;;  %v1136_v10 = vsel %vm1128_vm2, 1.0, %v2065_v27  ;;  %v1152_v11 = vsel %vm1144_vm3, 1.0, %v2065_v27 }
 0x145   : > { %v1912_v12 = vpop.eup %1911  ;;  %1181 = vst [vmem:[%s2238_s13 + $0x38] sm:$0x3f] %v1173_v8  ;;  %v1160_v14 = vsub.f32 %v1136_v10, %v1152_v11  ;;  %v1606_v16 = vmul.f32 -1.442695, %v1120_v5  ;;  %v1140_v13 = vsel %vm1132_vm0, 1.0, %v2065_v27  ;;  %v1156_v17 = vsel %vm1148_vm1, 1.0, %v2065_v27 }
 0x146   : > { %1921 = vrcp.f32 %v1214_v9  ;;  %v1218_v18 = vadd.f32 1.0, %v1912_v12  ;;  %v1164_v19 = vsub.f32 %v1140_v13, %v1156_v17  ;;  %v1610_v21 = vmul.f32 -1.442695, %v1124_v55 }
 0x147   : > { %v1168_v22 = vadd.f32 %v1160_v14, %v1112_v54  ;;  %1184 = vst [vmem:[%s2240_s27 + $0x10] sm:$0xff] %v1160_v14  ;;  %1923 = vpow2.f32 %v1606_v16 }
 0x148   : > { %1925 = vrcp.f32 %v1218_v18  ;;  %v1172_v23 = vadd.f32 %v1164_v19, %v2543_v20  ;;  %1188 = vst [vmem:[%s2240_s27 + $0x30] sm:$0xff] %v1164_v19 }
 0x149   : > { %1176 = vst [vmem:[%s2238_s13 + $0x10] sm:$0xff] %v1168_v22  ;;  %1927 = vpow2.f32 %v1610_v21 }
 0x14a   : > { %1950 = shalt.err (!%p1947_p9)
}
 0x14b   : > { %s1951_s27 = scalar_lea.hbm %s2599_s22, 1024  ;;  %s1955_s15 = scalar_lea.hbm %s2714_s6, 12288 }
 0x14c   : > { %p1952_p10 = scmp.ne.s32.totalorder %s2599_s22, %s1951_s27  ;;  %p1956_p13 = scmp.lt.u32.totalorder %s2599_s22, %s2714_s6 }
 0x14d   : > { %p1957_p0 = scmp.lt.u32.totalorder %s1955_s15, %s1951_s27  ;;  %p1959_p2 = scmp.lt.u32.totalorder %s1951_s27, %s2599_s22 }
 0x14e   : > { %p1953_p11 = pnand %p1952_p10, %p2176_p3 }
 0x14f   : > { %p1958_p1 = por %p1957_p0, %p1956_p13 }
 0x150   : > { %p1954_p12 = pneg %p1953_p11 }
 0x151   : > { %p1960_p4 = por %p1959_p2, %p1958_p1 }
 0x153   : > { %p1961_p5 = pnand %p1960_p4, %p1954_p12 }
 0x155   : > { %1964 = shalt.err (!%p1961_p5)
}
 0x156   : > { %s2067_s23 = smov 128   ;;  %s2068_s20 = smov 8   ;;  %v1914_v20 = vpop.eup %1913  ;;  %1180 = vst [vmem:[%s2238_s13 + $0x30] sm:$0xff] %v1172_v23 }
 0x157   : > { %1826 = dma.vmem_to_hbm [thread:$0]  (%p2176_p3), %s2601_s1, 1024, %s2599_s22, %s1247_s30, %s2067_s23, %s2067_s23, %s2068_s20   ;;  %v1217_v24 = vadd.f32 1.0, %v1914_v20  ;;  %v1916_v25 = vpop.eup %1915 }
 0x158   : > { %v1918_v26 = vpop.eup %1917  ;;  %1243 = vst [vmem:[%s2242_s7 + $0x28] sm:$0xff] %v1916_v25  ;;  %s1300_s13 = sshll.u32 %s2242_s7, 4  ;;  %s2745_s22 = sld [smem:[#allocation19_spill]]  ;;  %s2650_s13 = int_to_ptr.vmem [resolvable:$true] %s1300_s13 }
 0x159   : > { %1929 = vrcp.f32 %v1217_v24  ;;  %v1920_v61 = vpop.eup %1919  ;;  %1239 = vst [vmem:[%s2242_s7 + $0x8] sm:$0xff] %v1918_v26  ;;  %s1252_s24 = scalar_lea.sflag [#allocation5], %s2197_s12  ;;  %s1965_s25 = scalar_lea.vmem %s2650_s13, 1024 }
 0x15a   : > { %v1221_v62 = vadd.f32 1.0, %v1920_v61  ;;  %v1922_v27 = vpop.eup %1921  ;;  %p1966_p6 = scmp.ne.s32.totalorder %s2650_s13, %s1965_s25  ;;  %s2069_s28 = smov [#allocation4]  }
 0x15b   : > { %v1924_v28 = vpop.eup %1923  ;;  %1238 = vst [vmem:[%s2242_s7] sm:$0xff] %v1922_v27  ;;  %s1969_s16 = sshll.u32 %s2069_s28, 4  ;;  %s1970_s16 = int_to_ptr.vmem [resolvable:$false] %s1969_s16 }
 0x15c   : > { %1931 = vrcp.f32 %v1221_v62  ;;  %v1926_v29 = vpop.eup %1925  ;;  %v1216_v30 = vadd.f32 1.0, %v1924_v28  ;;  %p1967_p7 = pnand %p1966_p6, %p2176_p3  ;;  %s1971_s17 = scalar_lea.vmem %s1970_s16, 2048 }
 0x15d   : > { %v1928_v15 = vpop.eup %1927  ;;  %1242 = vst [vmem:[%s2242_s7 + $0x20] sm:$0xff] %v1926_v29  ;;  %p1972_p10 = scmp.lt.s32.totalorder %s2650_s13, %s1970_s16  ;;  %p1973_p11 = scmp.lt.s32.totalorder %s1971_s17, %s1965_s25 }
 0x15e   : > { %1933 = vrcp.f32 %v1216_v30  ;;  %v1220_v31 = vadd.f32 1.0, %v1928_v15  ;;  %s2648_s30 = scalar_lea.hbm %s2745_s22, %s1616_s21  ;;  %p1968_p9 = pneg %p1967_p7 }
 0x15f   : > { %p1974_p12 = por %p1973_p11, %p1972_p10 }
 0x160   : > { %1935 = vrcp.f32 %v1220_v31 }
 0x161   : > { %p1975_p13 = pnand %p1974_p12, %p1968_p9 }
 0x163   : > { %v1930_v32 = vpop.eup %1929 }
 0x164   : > { %1241 = vst [vmem:[%s2242_s7 + $0x18] sm:$0xff] %v1930_v32 }
 0x166   : > { %v1932_v33 = vpop.eup %1931 }
 0x167   : > { %1245 = vst [vmem:[%s2242_s7 + $0x38] sm:$0x3f] %v1932_v33 }
 0x168   : > { %v1934_v34 = vpop.eup %1933 }
 0x169   : > { %1240 = vst [vmem:[%s2242_s7 + $0x10] sm:$0xff] %v1934_v34 }
 0x16a   : > { %v1936_v35 = vpop.eup %1935 }
 0x16b   : > { %1244 = vst [vmem:[%s2242_s7 + $0x30] sm:$0xff] %v1936_v35 }
 0x16c   : > { %1978 = shalt.err (!%p1975_p13)
}
 0x16d   : > { %s1979_s7 = scalar_lea.hbm %s2648_s30, 1024  ;;  %s1983_s29 = scalar_lea.hbm %s2745_s22, 12288 }
 0x16e   : > { %p1980_p0 = scmp.ne.s32.totalorder %s2648_s30, %s1979_s7  ;;  %p1984_p4 = scmp.lt.u32.totalorder %s2648_s30, %s2745_s22 }
 0x16f   : > { %p1985_p5 = scmp.lt.u32.totalorder %s1983_s29, %s1979_s7  ;;  %p1987_p7 = scmp.lt.u32.totalorder %s1979_s7, %s2648_s30 }
 0x170   : > { %p1981_p1 = pnand %p1980_p0, %p2176_p3 }
 0x171   : > { %p1986_p6 = por %p1985_p5, %p1984_p4 }
 0x172   : > { %p1982_p2 = pneg %p1981_p1 }
 0x173   : > { %p1988_p9 = por %p1987_p7, %p1986_p6 }
 0x175   : > { %p1989_p10 = pnand %p1988_p9, %p1982_p2 }
 0x177   : > { %1992 = shalt.err (!%p1989_p10)
}
 0x178   : > { %1827 = dma.vmem_to_hbm [thread:$0]  (%p2176_p3), %s2650_s13, 1024, %s2648_s30, %s1252_s24, %s2067_s23, %s2067_s23, %s2068_s20  }
 0x179 PF: > { %s2746_s18 = sld [smem:[#allocation13_spill]]  ;;  %s2747_s14 = sld [smem:[#allocation8_spill]] }
 0x17f   : > { %p1837_p11 = scmp.ge.s32.totalorder %s2746_s18, 2  ;;  %s1327_s11 = sand.u32 1, %s2747_s14  }
 0x180   : > { %s1328_s25 = scalar_lea.sflag [#allocation3], %s1327_s11 }
 0x181   : > { %p1831_p12 = pnand %p1837_p11, %p2185_p8 }
 0x183   : > { %2026 = dma.done.wait (!%p1831_p12), %s1328_s25, 1024  }
 0x184   : > { %2028 = vsyncadd (!%p1831_p12), %s1328_s25, 4294966272  ;;  %s1337_s26 = scalar_lea.sflag [#allocation5], %s1327_s11 }
 0x185   : > { %2030 = dma.done.wait (!%p1831_p12), %s1337_s26, 1024  }
 0x186   : > { %2032 = vsyncadd (!%p1831_p12), %s1337_s26, 4294966272  ;;  %s27_s20 = sadd.s32 1, %s2746_s18   ;;  %s2749_s13 = sld [smem:[#allocation9_spill]] }
 0x187   : > { %p24_p13 = scmp.ge.s32.totalorder %s27_s20, 14   ;;  %s2750_s14 = sld [smem:[#allocation10_spill]] }
 0x188   : > { %s2751_s15 = sld [smem:[#allocation17_spill]]  ;;  %s2752_s16 = sld [smem:[#allocation11_spill]] }
 0x189   : > { %s2753_s17 = sld [smem:[#allocation12_spill]]  ;;  %s2754_s18 = sld [smem:[#allocation14_spill]] }
 0x18a   : > { %s2755_s19 = sld [smem:[#allocation15_spill]]  ;;  %26 = sbr.rel (!%p24_p13) target bundleno = 10 (0xa), region = 147 }
 0x191   :  { %1366 = vsyncpa [#allocation3], 1 }
 0x192   :  { %1368 = vsyncpa [#allocation3 + $0x1], 1 }
 0x193   :  { %1369 = vsyncpa [#allocation5], 1 }
 0x194   :  { %1371 = vsyncpa [#allocation5 + $0x1], 1 }

</bundles_post_ra>
